<compile_context>
chip_gen: v5e
topology: v5e:2x2
jax: 0.10.0
libtpu: 0.0.40
codegen_flags: <defaults>
</compile_context>

<pallas_src>
import math

import jax
import jax.numpy as jnp
from jax.experimental import pallas as pl
from jax.experimental.pallas import tpu as pltpu

_HIGHEST = jax.lax.Precision.HIGHEST


def attention_kernel(x_ref, wblk_ref, bias_ref, expand_ref, seg_ref, o_ref):
    # x_ref:      (TB, S*F)   lane-dense flattened batch rows
    # wblk_ref:   (S*F, S)    block-diagonal copies of weight  (scores)
    # bias_ref:   (1, S)
    # expand_ref: (S, S*F)    0/1: broadcast a back over the F features/step
    # seg_ref:    (S*F, F)    0/1: segment-sum over the S steps
    # o_ref:      (TB, F)
    x = x_ref[...].astype(jnp.float32)                               # (TB, S*F)

    # eij = x @ weight, computed with a block-diagonal weight so the contraction
    # stays lane-dense (K = S*F) on the MXU.
    e = jnp.dot(x, wblk_ref[...], precision=_HIGHEST,
                preferred_element_type=jnp.float32)                  # (TB, S)
    e = jnp.tanh(e + bias_ref[...])
    a = jnp.exp(e)                                                   # (TB, S)

    denom = jnp.sum(a, axis=-1, keepdims=True) + jnp.float32(1e-10)  # (TB, 1)

    # Broadcast a to the flattened feature layout and do the weighted step-sum,
    # both on the MXU (replaces the old XLU sublane reduction).
    a_rep = jnp.dot(a, expand_ref[...], precision=_HIGHEST,
                    preferred_element_type=jnp.float32)              # (TB, S*F)
    acc = jnp.dot(x * a_rep, seg_ref[...], precision=_HIGHEST,
                  preferred_element_type=jnp.float32)                # (TB, F)

    # Exact divide (approx reciprocal previously exceeded the 1e-4 tolerance).
    o_ref[...] = (acc / denom).astype(o_ref.dtype)


def _round_up(n, m):
    return ((n + m - 1) // m) * m


def _choose_tb(B, row_bytes):
    """Batch-tile rows.  Rows are lane-dense (S*F f32) so sizing is exact."""
    # Target ~4 MiB of x per tile (double-buffered -> 8 MiB of VMEM).
    max_rows = max(8, ((4 * 1024 * 1024) // max(row_bytes, 1)) // 8 * 8)
    tb = min(_round_up(max(B, 1), 8), max_rows)
    # For batches spanning more than one tile keep >= 4 grid blocks so both
    # v7x TensorCores get >= 2 steps each (prefetch/writeback overlap).  Small
    # batches stay in a single tile (no parallelism to gain on 1-TC v5e/v6e).
    if B > tb and pl.cdiv(B, tb) < 4:
        tb = max(8, _round_up(pl.cdiv(B, 4), 8))
    return tb


def attention_forward(x, weight, bias, *, tb=None):
    """x: (B, S, F) f32, weight: (F, 1) f32, bias: (S,) f32 -> (B, F) f32.

    mask is not supported (the PyTorch forward is exercised with mask=None).
    """
    B, S, F = x.shape
    SF = S * F
    row_bytes = SF * jnp.dtype(x.dtype).itemsize

    if tb is None:
        tb = _choose_tb(B, row_bytes)
    tb = max(8, _round_up(tb, 8))

    n_blocks = pl.cdiv(B, tb)
    Bp = n_blocks * tb

    # Lane-dense view of x: (B, S*F).
    x2 = x.reshape(B, SF)
    if Bp != B:
        x2 = jnp.pad(x2, ((0, Bp - B), (0, 0)))

    w = weight.reshape(F).astype(jnp.float32)
    eye_s = jnp.eye(S, dtype=jnp.float32)
    # wblk[s*F + f, s'] = (s == s') * w[f]
    wblk = jnp.kron(eye_s, w.reshape(F, 1))                   # (S*F, S)
    # expand[s, s*F + f] = 1
    expand = jnp.kron(eye_s, jnp.ones((1, F), jnp.float32))   # (S, S*F)
    # seg[s*F + f, f'] = (f == f')
    seg = jnp.kron(jnp.ones((S, 1), jnp.float32),
                   jnp.eye(F, dtype=jnp.float32))             # (S*F, F)
    bias2 = bias.reshape(1, S).astype(jnp.float32)

    # VMEM footprint: double-buffered x + out + small constants, plus slack.
    x_buf = 2 * tb * SF * 4
    o_buf = 2 * tb * F * 4
    vmem_limit = int(min(max(2 * (x_buf + o_buf) + (4 << 20), 8 << 20), 32 << 20))

    cost = pl.CostEstimate(
        flops=2 * Bp * SF * (2 * S + F) + 4 * Bp * SF,
        transcendentals=2 * Bp * S,
        bytes_accessed=Bp * SF * 4 + Bp * F * 4 + SF * (2 * F + 2 * S) * 4,
    )

    out = pl.pallas_call(
        attention_kernel,
        out_shape=jax.ShapeDtypeStruct((Bp, F), x.dtype),
        grid_spec=pltpu.PrefetchScalarGridSpec(
            num_scalar_prefetch=0,
            grid=(n_blocks,),
            in_specs=[
                pl.BlockSpec((tb, SF), lambda i: (i, 0)),
                pl.BlockSpec((SF, S), lambda i: (0, 0)),
                pl.BlockSpec((1, S), lambda i: (0, 0)),
                pl.BlockSpec((S, SF), lambda i: (0, 0)),
                pl.BlockSpec((SF, F), lambda i: (0, 0)),
            ],
            out_specs=pl.BlockSpec((tb, F), lambda i: (i, 0)),
        ),
        compiler_params=pltpu.CompilerParams(
            dimension_semantics=("parallel",),
            vmem_limit_bytes=vmem_limit,
        ),
        cost_estimate=cost,
    )(x2, wblk, bias2, expand, seg)

    return out[:B]


def reference_forward(x, weight, bias):
    # Pure-JAX reference kept in exact f32 (no MXU precision demotion).
    e = jnp.sum(x * weight.reshape(1, 1, -1), axis=-1)       # (B, S)
    e = jnp.tanh(e + bias[None, :])
    a = jnp.exp(e)
    a = a / (jnp.sum(a, axis=1, keepdims=True) + 1e-10)
    return jnp.sum(x * a[..., None], axis=1)


if __name__ == "__main__":
    # Shapes implied by the module usage: feature_dim=32, step_dim=8
    S, F = 8, 32

    key = jax.random.PRNGKey(0)
    kx, kw, kx2 = jax.random.split(key, 3)

    # kaiming_uniform_ on a (feature_dim, 1) tensor: fan_in = 1, gain = sqrt(2),
    # bound = gain * sqrt(3 / fan_in) = sqrt(6)
    bound = math.sqrt(6.0)
    weight = jax.random.uniform(kw, (F, 1), jnp.float32, -bound, bound)
    bias = jnp.zeros((S,), jnp.float32)   # self.b initialized to zeros

    # Case 1: tiny batch (single grid step, batch padded to one 8-row tile)
    x_small = jax.random.normal(kx, (2, S, F), jnp.float32)
    out_small = jax.block_until_ready(attention_forward(x_small, weight, bias))
    ref_small = reference_forward(x_small, weight, bias)
    assert out_small.shape == (2, F)
    err = jnp.max(jnp.abs(out_small - ref_small))
    assert jnp.allclose(out_small, ref_small, atol=1e-4, rtol=1e-4), (
        f"max abs err = {err}"
    )

    # Case 2: larger batch exercising the blocked grid (>= 2 steps) + padding
    x_big = jax.random.normal(kx2, (50, S, F), jnp.float32)
    out_big = jax.block_until_ready(attention_forward(x_big, weight, bias, tb=32))
    ref_big = reference_forward(x_big, weight, bias)
    assert out_big.shape == (50, F)
    err = jnp.max(jnp.abs(out_big - ref_big))
    assert jnp.allclose(out_big, ref_big, atol=1e-4, rtol=1e-4), (
        f"max abs err = {err}"
    )

    # TODO(synk): optional `mask` argument not implemented (forward uses mask=None)
    print("KERNEL_OK")
</pallas_src>

<mosaic_0001>
module attributes {stable_mosaic.version = 11 : i64} {
  func.func @attention_kernel(%arg0: i32, %arg1: memref<8x256xf32, #tpu.memory_space<vmem>>, %arg2: memref<256x8xf32, #tpu.memory_space<vmem>>, %arg3: memref<1x8xf32, #tpu.memory_space<vmem>>, %arg4: memref<8x256xf32, #tpu.memory_space<vmem>>, %arg5: memref<256x32xf32, #tpu.memory_space<vmem>>, %arg6: memref<8x32xf32, #tpu.memory_space<vmem>>) attributes {dimension_semantics = [#tpu.dimension_semantics<parallel>], iteration_bounds = array<i64: 1>, scalar_prefetch = 0 : i64, scratch_operands = 0 : i64, tpu.core_type = #tpu.core_type<tc>, window_params = [{transform_indices = @transform_0, window_bounds = array<i64: 8, 256>}, {pipeline_mode = #tpu.pipeline_mode<synchronous>, transform_indices = @transform_1, window_bounds = array<i64: 256, 8>}, {pipeline_mode = #tpu.pipeline_mode<synchronous>, transform_indices = @transform_2, window_bounds = array<i64: 1, 8>}, {pipeline_mode = #tpu.pipeline_mode<synchronous>, transform_indices = @transform_3, window_bounds = array<i64: 8, 256>}, {pipeline_mode = #tpu.pipeline_mode<synchronous>, transform_indices = @transform_4, window_bounds = array<i64: 256, 32>}, {transform_indices = @transform_5, window_bounds = array<i64: 8, 32>}]} {
    %c0 = arith.constant 0 : index
    %c0_0 = arith.constant 0 : index
    %0 = vector.load %arg1[%c0, %c0_0] : memref<8x256xf32, #tpu.memory_space<vmem>>, vector<8x256xf32>
    %c0_1 = arith.constant 0 : index
    %c0_2 = arith.constant 0 : index
    %1 = vector.load %arg2[%c0_1, %c0_2] : memref<256x8xf32, #tpu.memory_space<vmem>>, vector<256x8xf32>
    %cst = arith.constant dense<0.000000e+00> : vector<8x8xf32>
    %2 = tpu.matmul %0, %1, %cst {dimension_numbers = #tpu.dot_dimension_numbers<[1], [0], [0], [1], [0, 0, 1, 1], [], []>, precision = #tpu.contract_precision<fp32>} : vector<8x256xf32>, vector<256x8xf32>, vector<8x8xf32> -> vector<8x8xf32>
    %c0_3 = arith.constant 0 : index
    %c0_4 = arith.constant 0 : index
    %3 = vector.load %arg3[%c0_3, %c0_4] : memref<1x8xf32, #tpu.memory_space<vmem>>, vector<1x8xf32>
    %4 = vector.broadcast %3 : vector<1x8xf32> to vector<8x8xf32>
    %5 = arith.addf %2, %4 : vector<8x8xf32>
    %6 = math.tanh %5 : vector<8x8xf32>
    %7 = math.exp %6 : vector<8x8xf32>
    %cst_5 = arith.constant dense<0.000000e+00> : vector<8xf32>
    %8 = vector.multi_reduction <add>, %7, %cst_5 [1] : vector<8x8xf32> to vector<8xf32>
    %9 = vector.shape_cast %8 : vector<8xf32> to vector<8x1xf32>
    %cst_6 = arith.constant 1.000000e-10 : f32
    %10 = vector.broadcast %cst_6 : f32 to vector<8x1xf32>
    %11 = arith.addf %9, %10 : vector<8x1xf32>
    %c0_7 = arith.constant 0 : index
    %c0_8 = arith.constant 0 : index
    %12 = vector.load %arg4[%c0_7, %c0_8] : memref<8x256xf32, #tpu.memory_space<vmem>>, vector<8x256xf32>
    %cst_9 = arith.constant dense<0.000000e+00> : vector<8x256xf32>
    %13 = tpu.matmul %7, %12, %cst_9 {dimension_numbers = #tpu.dot_dimension_numbers<[1], [0], [0], [1], [0, 0, 1, 1], [], []>, precision = #tpu.contract_precision<fp32>} : vector<8x8xf32>, vector<8x256xf32>, vector<8x256xf32> -> vector<8x256xf32>
    %14 = arith.mulf %0, %13 : vector<8x256xf32>
    %c0_10 = arith.constant 0 : index
    %c0_11 = arith.constant 0 : index
    %15 = vector.load %arg5[%c0_10, %c0_11] : memref<256x32xf32, #tpu.memory_space<vmem>>, vector<256x32xf32>
    %cst_12 = arith.constant dense<0.000000e+00> : vector<8x32xf32>
    %16 = tpu.matmul %14, %15, %cst_12 {dimension_numbers = #tpu.dot_dimension_numbers<[1], [0], [0], [1], [0, 0, 1, 1], [], []>, precision = #tpu.contract_precision<fp32>} : vector<8x256xf32>, vector<256x32xf32>, vector<8x32xf32> -> vector<8x32xf32>
    %17 = vector.broadcast %11 : vector<8x1xf32> to vector<8x32xf32>
    %18 = arith.divf %16, %17 : vector<8x32xf32>
    %c0_13 = arith.constant 0 : index
    %c0_14 = arith.constant 0 : index
    %19 = vector.load %arg6[%c0_13, %c0_14] : memref<8x32xf32, #tpu.memory_space<vmem>>, vector<8x32xf32>
    tpu.vector_store %arg6[%c0_13, %c0_14], %18 {strides = array<i32>} : memref<8x32xf32, #tpu.memory_space<vmem>>, vector<8x32xf32>,
    return
  }
  func.func @transform_0(%arg0: i32) -> (i32, i32) {
    %c0_i32 = arith.constant 0 : i32
    %c0_i32_0 = arith.constant 0 : i32
    return %arg0, %c0_i32 : i32, i32
  }
  func.func @transform_1(%arg0: i32) -> (i32, i32) {
    %c0_i32 = arith.constant 0 : i32
    %c0_i32_0 = arith.constant 0 : i32
    %c0_i32_1 = arith.constant 0 : i32
    return %c0_i32, %c0_i32_0 : i32, i32
  }
  func.func @transform_2(%arg0: i32) -> (i32, i32) {
    %c0_i32 = arith.constant 0 : i32
    %c0_i32_0 = arith.constant 0 : i32
    %c0_i32_1 = arith.constant 0 : i32
    return %c0_i32, %c0_i32_0 : i32, i32
  }
  func.func @transform_3(%arg0: i32) -> (i32, i32) {
    %c0_i32 = arith.constant 0 : i32
    %c0_i32_0 = arith.constant 0 : i32
    %c0_i32_1 = arith.constant 0 : i32
    return %c0_i32, %c0_i32_0 : i32, i32
  }
  func.func @transform_4(%arg0: i32) -> (i32, i32) {
    %c0_i32 = arith.constant 0 : i32
    %c0_i32_0 = arith.constant 0 : i32
    %c0_i32_1 = arith.constant 0 : i32
    return %c0_i32, %c0_i32_0 : i32, i32
  }
  func.func @transform_5(%arg0: i32) -> (i32, i32) {
    %c0_i32 = arith.constant 0 : i32
    %c0_i32_0 = arith.constant 0 : i32
    return %arg0, %c0_i32 : i32, i32
  }
}

</mosaic_0001>

<bundles_post_ra>
// kernel: tpu_custom_call.1
= control target key start
LH: loop header
LB: loop body
LE: loop exit
PB: predicated region body
PF: predicated region fallthrough
CT: control target
= control target key end

     0   :  { %s3084_s0 = inlined_call_operand.vmem [shape: f32[8,256], index: 0, kind: input, shape index: {}]   ;;  %s3085_s1 = inlined_call_operand.vmem [shape: f32[256,8], index: 1, kind: input, shape index: {}]   ;;  %s3086_s2 = inlined_call_operand.vmem [shape: f32[1,8], index: 2, kind: input, shape index: {}]   ;;  %s3087_s3 = inlined_call_operand.vmem [shape: f32[8,256], index: 3, kind: input, shape index: {}]   ;;  %s3088_s4 = inlined_call_operand.vmem [shape: f32[256,32], index: 4, kind: input, shape index: {}]   ;;  %s3089_s5 = inlined_call_operand.hbm [shape: f32[8,32], index: 5, kind: output, shape index: {}]  }
   0x1   :  { %v38_v0 = vld [vmem:[%s3085_s1 + $0x78] sm:$0xff]  ;;  %v37_v1 = vld [vmem:[%s3085_s1 + $0x70] sm:$0xff]  ;;  %v36_v2 = vld [vmem:[%s3085_s1 + $0x68] sm:$0xff] }
   0x2   :  { %v1871_v3 = vand.u32 4294901760, %v38_v0  ;;  %v1873_v4 = vand.u32 4294901760, %v37_v1  ;;  %v1875_v5 = vand.u32 4294901760, %v36_v2  ;;  %v35_v6 = vld [vmem:[%s3085_s1 + $0x60] sm:$0xff]  ;;  %v34_v7 = vld [vmem:[%s3085_s1 + $0x58] sm:$0xff]  ;;  %v33_v8 = vld [vmem:[%s3085_s1 + $0x50] sm:$0xff] }
   0x3   :  { %v1886_v9 = vand.u32 4294901760, %v35_v6  ;;  %v1888_v10 = vand.u32 4294901760, %v34_v7  ;;  %v1890_v11 = vand.u32 4294901760, %v33_v8  ;;  %v32_v12 = vld [vmem:[%s3085_s1 + $0x48] sm:$0xff]  ;;  %v31_v13 = vld [vmem:[%s3085_s1 + $0x40] sm:$0xff]  ;;  %v30_v21 = vld [vmem:[%s3085_s1 + $0x38] sm:$0xff] }
   0x4   :  { %60 = vmatpush.msra.mxu0 %v1871_v3  ;;  %v1900_v14 = vsub.f32 %v38_v0, %v1871_v3  ;;  %v1903_v15 = vsub.f32 %v37_v1, %v1873_v4  ;;  %256 = vmatpush.msra.mxu3 %v1871_v3  ;;  %v1907_v16 = vsub.f32 %v36_v2, %v1875_v5  ;;  %v1909_v17 = vand.u32 4294901760, %v32_v12  ;;  %v29_v26 = vld [vmem:[%s3085_s1 + $0x30] sm:$0xff]  ;;  %v28_v36 = vld [vmem:[%s3085_s1 + $0x28] sm:$0xff] }
   0x5   :  { %v1912_v18 = vsub.f32 %v35_v6, %v1886_v9  ;;  %v1915_v19 = vsub.f32 %v34_v7, %v1888_v10  ;;  %v1918_v20 = vsub.f32 %v33_v8, %v1890_v11  ;;  %v1928_v25 = vand.u32 4294901760, %v31_v13 }
   0x6   :  { %62 = vmatpush.msra.mxu0 %v1873_v4  ;;  %203 = vmatpush.msra.mxu2 %v1900_v14  ;;  %v102_v22 = vand.u32 4294901760, %v1900_v14  ;;  %v3105_v23 = vand.u32 4294901760, %v1903_v15  ;;  %v3103_v24 = vand.u32 4294901760, %v1907_v16  ;;  %v1937_v29 = vsub.f32 %v32_v12, %v1909_v17 }
   0x7   :  { %258 = vmatpush.msra.mxu3 %v1873_v4  ;;  %v3102_v27 = vand.u32 4294901760, %v1912_v18  ;;  %v3099_v28 = vand.u32 4294901760, %v1915_v19  ;;  %v1950_v33 = vand.u32 4294901760, %v30_v21  ;;  %v1953_v34 = vand.u32 4294901760, %v29_v26 }
   0x8   :  { %64 = vmatpush.msra.mxu0 %v1875_v5  ;;  %206 = vmatpush.msra.mxu2 %v1903_v15  ;;  %v103_v30 = vsub.f32 %v1900_v14, %v102_v22  ;;  %v109_v31 = vsub.f32 %v1903_v15, %v3105_v23  ;;  %v115_v32 = vsub.f32 %v1907_v16, %v3103_v24  ;;  %v3097_v35 = vand.u32 4294901760, %v1918_v20 }
   0x9   :  { %260 = vmatpush.msra.mxu3 %v1875_v5 }
   0xa   :  { %10 = vsyncpa [#allocation3], 0  ;;  %66 = vmatpush.msra.mxu0 %v1886_v9  ;;  %v104_v37 = vand.u32 4294901760, %v103_v30  ;;  %209 = vmatpush.msra.mxu2 %v1907_v16  ;;  %v110_v38 = vand.u32 4294901760, %v109_v31  ;;  %v121_v39 = vsub.f32 %v1912_v18, %v3102_v27  ;;  %v1965_v40 = vsub.f32 %v31_v13, %v1928_v25  ;;  %v27_v42 = vld [vmem:[%s3085_s1 + $0x20] sm:$0xff]  ;;  %v26_v47 = vld [vmem:[%s3085_s1 + $0x18] sm:$0xff] }
   0xb   :  { %262 = vmatpush.msra.mxu3 %v1886_v9  ;;  %v127_v41 = vsub.f32 %v1915_v19, %v3099_v28  ;;  %v116_v43 = vand.u32 4294901760, %v115_v32  ;;  %v1975_v44 = vand.u32 4294901760, %v28_v36  ;;  %v3096_v45 = vand.u32 4294901760, %v1937_v29  ;;  %v25_v54 = vld [vmem:[%s3085_s1 + $0x10] sm:$0xff]  ;;  %v54_v59 = vld [vmem:[%s3085_s1 + $0xf8] sm:$0xff]  ;;  %v24_v61 = vld [vmem:[%s3085_s1 + $0x8] sm:$0xff] }
   0xc   :  { %68 = vmatpush.msra.mxu0 %v1888_v10  ;;  %105 = vmatpush.msra.mxu1 %v104_v37  ;;  %v1979_v46 = vsub.f32 %v30_v21, %v1950_v33  ;;  %v133_v48 = vsub.f32 %v1918_v20, %v3097_v35  ;;  %v122_v49 = vand.u32 4294901760, %v121_v39  ;;  %v1990_v50 = vand.u32 4294901760, %v27_v42  ;;  %v23_v2 = vld [vmem:[%s3085_s1] sm:$0xff]  ;;  %v53_v6 = vld [vmem:[%s3085_s1 + $0xf0] sm:$0xff]  ;;  %v52_v32 = vld [vmem:[%s3085_s1 + $0xe8] sm:$0xff]  ;;  %s1786_s28 = sshll.u32 %s3089_s5, 4  ;;  %s1787_s28 = int_to_ptr.hbm [resolvable:$true] %s1786_s28 }
   0xd   :  { %212 = vmatpush.msra.mxu2 %v1912_v18  ;;  %264 = vmatpush.msra.mxu3 %v1888_v10  ;;  %v3095_v51 = vand.u32 4294901760, %v1965_v40  ;;  %v1994_v52 = vsub.f32 %v29_v26, %v1953_v34  ;;  %v1998_v53 = vand.u32 4294901760, %v26_v47  ;;  %v128_v55 = vand.u32 4294901760, %v127_v41 }
   0xe   :  { %70 = vmatpush.msra.mxu0 %v1890_v11  ;;  %111 = vmatpush.msra.mxu1 %v110_v38  ;;  %v139_v56 = vsub.f32 %v1937_v29, %v3096_v45  ;;  %v3094_v57 = vand.u32 4294901760, %v1979_v46  ;;  %v2009_v58 = vsub.f32 %v28_v36, %v1975_v44  ;;  %v134_v60 = vand.u32 4294901760, %v133_v48  ;;  %v47_v45 = vld [vmem:[%s3085_s1 + $0xc0] sm:$0xff] }
   0xf   :  { %215 = vmatpush.msra.mxu2 %v1915_v19  ;;  %266 = vmatpush.msra.mxu3 %v1890_v11  ;;  %v145_v62 = vsub.f32 %v1965_v40, %v3095_v51  ;;  %v2023_v63 = vand.u32 4294901760, %v25_v54  ;;  %v3093_v0 = vand.u32 4294901760, %v1994_v52  ;;  %v2027_v1 = vsub.f32 %v27_v42, %v1990_v50 }
  0x10   :  { %72 = vmatpush.msra.mxu0 %v1909_v17  ;;  %117 = vmatpush.msra.mxu1 %v116_v43  ;;  %v2038_v7 = vsub.f32 %v26_v47, %v1998_v53  ;;  %v2040_v8 = vand.u32 4294901760, %v54_v59  ;;  %v140_v12 = vand.u32 4294901760, %v139_v56  ;;  %v151_v13 = vsub.f32 %v1979_v46, %v3094_v57  ;;  %v51_v43 = vld [vmem:[%s3085_s1 + $0xe0] sm:$0xff] }
  0x11   :  { %218 = vmatpush.msra.mxu2 %v1918_v20  ;;  %268 = vmatpush.msra.mxu3 %v1909_v17  ;;  %v2046_v21 = vand.u32 4294901760, %v24_v61  ;;  %v3091_v26 = vand.u32 4294901760, %v2009_v58  ;;  %v2051_v30 = vand.u32 4294901760, %v23_v2  ;;  %v2053_v31 = vand.u32 4294901760, %v53_v6 }
  0x12   :  { %74 = vmatpush.msra.mxu0 %v1928_v25  ;;  %123 = vmatpush.msra.mxu1 %v122_v49  ;;  %v146_v36 = vand.u32 4294901760, %v145_v62  ;;  %v157_v37 = vsub.f32 %v1994_v52, %v3093_v0  ;;  %v3090_v38 = vand.u32 4294901760, %v2027_v1  ;;  %v2064_v39 = vsub.f32 %v25_v54, %v2023_v63 }
  0x13   :  { %221 = vmatpush.msra.mxu2 %v1937_v29  ;;  %270 = vmatpush.msra.mxu3 %v1928_v25  ;;  %v3092_v41 = vand.u32 4294901760, %v2038_v7  ;;  %v2070_v42 = vsub.f32 %v54_v59, %v2040_v8  ;;  %v152_v47 = vand.u32 4294901760, %v151_v13  ;;  %v163_v48 = vsub.f32 %v2009_v58, %v3091_v26  ;;  %v50_v59 = vld [vmem:[%s3085_s1 + $0xd8] sm:$0xff]  ;;  %v49_v13 = vld [vmem:[%s3085_s1 + $0xd0] sm:$0xff] }
  0x14   :  { %76 = vmatpush.msra.mxu0 %v1950_v33  ;;  %129 = vmatpush.msra.mxu1 %v128_v55  ;;  %v2080_v49 = vsub.f32 %v24_v61, %v2046_v21  ;;  %v2082_v54 = vand.u32 4294901760, %v52_v32  ;;  %v2087_v55 = vsub.f32 %v23_v2, %v2051_v30  ;;  %v2090_v56 = vsub.f32 %v53_v6, %v2053_v31 }
  0x15   :  { %224 = vmatpush.msra.mxu2 %v1965_v40  ;;  %272 = vmatpush.msra.mxu3 %v1950_v33  ;;  %v169_v61 = vsub.f32 %v2027_v1, %v3090_v38  ;;  %v3098_v62 = vand.u32 4294901760, %v2064_v39  ;;  %v175_v2 = vsub.f32 %v2038_v7, %v3092_v41  ;;  %v3100_v6 = vand.u32 4294901760, %v2070_v42 }
  0x16   :  { %78 = vmatpush.msra.mxu0 %v1953_v34  ;;  %135 = vmatpush.msra.mxu1 %v134_v60  ;;  %v158_v60 = vand.u32 4294901760, %v157_v37  ;;  %v3101_v37 = vand.u32 4294901760, %v2080_v49  ;;  %v2114_v38 = vsub.f32 %v52_v32, %v2082_v54  ;;  %v2116_v26 = vand.u32 4294901760, %v50_v59 }
  0x17   :  { %227 = vmatpush.msra.mxu2 %v1979_v46  ;;  %274 = vmatpush.msra.mxu3 %v1953_v34  ;;  %v3106_v41 = vand.u32 4294901760, %v2087_v55  ;;  %v3104_v0 = vand.u32 4294901760, %v2090_v56  ;;  %v181_v32 = vsub.f32 %v2064_v39, %v3098_v62  ;;  %v2132_v51 = vand.u32 4294901760, %v49_v13 }
  0x18   :  { %80 = vmatpush.msra.mxu0 %v1975_v44  ;;  %141 = vmatpush.msra.mxu1 %v140_v12  ;;  %v2100_v12 = vand.u32 4294901760, %v51_v43  ;;  %v176_v35 = vand.u32 4294901760, %v175_v2  ;;  %v2148_v62 = vsub.f32 %v50_v59, %v2116_v26  ;;  %v46_v2 = vld [vmem:[%s3085_s1 + $0xb8] sm:$0xff]  ;;  %vm744_vm0 = vcmask 64512  }
  0x19   :  { %230 = vmatpush.msra.mxu2 %v1994_v52  ;;  %276 = vmatpush.msra.mxu3 %v1975_v44  ;;  %v182_v59 = vand.u32 4294901760, %v181_v32  ;;  %v2168_v24 = vsub.f32 %v49_v13, %v2132_v51  ;;  %v2173_v23 = vand.u32 4294901760, %v46_v2  ;;  %vm1777_vm5 = vcmask 261120  }
  0x1a   :  { %82 = vmatpush.msra.mxu0 %v1990_v50  ;;  %147 = vmatpush.msra.mxu1 %v146_v36  ;;  %v164_v36 = vand.u32 4294901760, %v163_v48  ;;  %v170_v48 = vand.u32 4294901760, %v169_v61  ;;  %v2130_v57 = vsub.f32 %v51_v43, %v2100_v12  ;;  %v187_v43 = vsub.f32 %v2080_v49, %v3101_v37 }
  0x1b   :  { %233 = vmatpush.msra.mxu2 %v2009_v58  ;;  %278 = vmatpush.msra.mxu3 %v1990_v50  ;;  %v3107_v61 = vand.u32 4294901760, %v2114_v38  ;;  %v193_v37 = vsub.f32 %v2087_v55, %v3106_v41  ;;  %v3109_v14 = vand.u32 4294901760, %v2148_v62 }
  0x1c   :  { %84 = vmatpush.msra.mxu0 %v1998_v53  ;;  %153 = vmatpush.msra.mxu1 %v152_v47  ;;  %v48_v47 = vld [vmem:[%s3085_s1 + $0xc8] sm:$0xff]  ;;  %v3108_v27 = vand.u32 4294901760, %v2130_v57  ;;  %v188_v32 = vand.u32 4294901760, %v187_v43 }
  0x1d   :  { %236 = vmatpush.msra.mxu2 %v2027_v1  ;;  %280 = vmatpush.msra.mxu3 %v1998_v53  ;;  %v2150_v28 = vand.u32 4294901760, %v48_v47  ;;  %v456_v13 = vsub.f32 %v2114_v38, %v3107_v61  ;;  %v44_v43 = vld [vmem:[%s3085_s1 + $0xa8] sm:$0xff]  ;;  %v194_v61 = vand.u32 4294901760, %v193_v37 }
  0x1e   :  { %86 = vmatpush.msra.mxu0 %v2023_v63  ;;  %159 = vmatpush.msra.mxu1 %v158_v60  ;;  %v444_v60 = vsub.f32 %v2070_v42, %v3100_v6  ;;  %v2160_v6 = vand.u32 4294901760, %v47_v45 }
  0x1f   :  { %239 = vmatpush.msra.mxu2 %v2038_v7  ;;  %282 = vmatpush.msra.mxu3 %v2023_v63  ;;  %v457_v37 = vand.u32 4294901760, %v456_v13 }
  0x20   :  { %88 = vmatpush.msra.mxu0 %v2046_v21  ;;  %165 = vmatpush.msra.mxu1 %v164_v36  ;;  %v450_v36 = vsub.f32 %v2090_v56, %v3104_v0  ;;  %v445_v0 = vand.u32 4294901760, %v444_v60  ;;  %v3114_v60 = vand.u32 4294901760, %v1903_v15 }
  0x21   :  { %242 = vmatpush.msra.mxu2 %v2064_v39  ;;  %284 = vmatpush.msra.mxu3 %v2046_v21 }
  0x22   :  { %90 = vmatpush.msra.mxu0 %v2051_v30  ;;  %171 = vmatpush.msra.mxu1 %v170_v48  ;;  %v45_v48 = vld [vmem:[%s3085_s1 + $0xb0] sm:$0xff]  ;;  %v451_v41 = vand.u32 4294901760, %v450_v36  ;;  %v3115_v36 = vand.u32 4294901760, %v1907_v16  ;;  %v2215_v16 = vand.u32 4294901760, %v44_v43 }
  0x23   :  { %245 = vmatpush.msra.mxu2 %v2080_v49  ;;  %286 = vmatpush.msra.mxu3 %v2051_v30 }
  0x24   :  { %297 = vmatpush.msrb.mxu0 %v102_v22  ;;  %177 = vmatpush.msra.mxu1 %v176_v35  ;;  %v2184_v22 = vsub.f32 %v48_v47, %v2150_v28  ;;  %v2190_v35 = vsub.f32 %v47_v45, %v2160_v6  ;;  %v462_v47 = vsub.f32 %v2130_v57, %v3108_v27 }
  0x25   :  { %248 = vmatpush.msra.mxu2 %v2087_v55  ;;  %446 = vmatpush.msrb.mxu3 %v445_v0  ;;  %v2205_v45 = vsub.f32 %v46_v2, %v2173_v23  ;;  %v468_v27 = vsub.f32 %v2148_v62, %v3109_v14  ;;  %v3116_v0 = vand.u32 4294901760, %v1912_v18  ;;  %v2244_v2 = vsub.f32 %v44_v43, %v2215_v16 }
  0x26   :  { %301 = vmatpush.msrb.mxu0 %v3114_v60  ;;  %183 = vmatpush.msra.mxu1 %v182_v59  ;;  %v2200_v60 = vand.u32 4294901760, %v45_v48  ;;  %v43_v59 = vld [vmem:[%s3085_s1 + $0xa0] sm:$0xff]  ;;  %v463_v13 = vand.u32 4294901760, %v462_v47 }
  0x27   :  { %401 = vmatpush.msrb.mxu2 %v2040_v8  ;;  %452 = vmatpush.msrb.mxu3 %v451_v41  ;;  %v2230_v18 = vand.u32 4294901760, %v43_v59  ;;  %v3118_v41 = vand.u32 4294901760, %v1915_v19  ;;  %v469_v47 = vand.u32 4294901760, %v468_v27  ;;  %v41_v27 = vld [vmem:[%s3085_s1 + $0x90] sm:$0xff] }
  0x28   :  { %305 = vmatpush.msrb.mxu0 %v3115_v36  ;;  %189 = vmatpush.msra.mxu1 %v188_v32  ;;  %v42_v32 = vld [vmem:[%s3085_s1 + $0x98] sm:$0xff]  ;;  %v3117_v36 = vand.u32 4294901760, %v2168_v24  ;;  %v2228_v15 = vsub.f32 %v45_v48, %v2200_v60  ;;  %v3119_v48 = vand.u32 4294901760, %v2184_v22 }
  0x29   :  { %403 = vmatpush.msrb.mxu2 %v2053_v31  ;;  %458 = vmatpush.msrb.mxu3 %v457_v37  ;;  %v2246_v19 = vand.u32 4294901760, %v42_v32  ;;  %v2275_v37 = vand.u32 4294901760, %v41_v27 }
  0x2a   :  { %309 = vmatpush.msrb.mxu0 %v3116_v0  ;;  %195 = vmatpush.msra.mxu1 %v194_v61  ;;  %v474_v14 = vsub.f32 %v2168_v24, %v3117_v36  ;;  %v21_v61 = vld [vmem:[%s3084_s0] sm:$0xff]  ;;  %v480_v36 = vsub.f32 %v2184_v22, %v3119_v48  ;;  %v2260_v48 = vsub.f32 %v43_v59, %v2230_v18 }
  0x2b   :  { %405 = vmatpush.msrb.mxu2 %v2082_v54  ;;  %464 = vmatpush.msrb.mxu3 %v463_v13 }
  0x2c   :  { %313 = vmatpush.msrb.mxu0 %v3118_v41  ;;  %364 = vmatpush.msrb.mxu1 %v1871_v3  ;;  %v3120_v3 = vand.u32 4294901760, %v1918_v20  ;;  %v3121_v41 = vand.u32 4294901760, %v2190_v35  ;;  %v475_v43 = vand.u32 4294901760, %v474_v14  ;;  %v2262_v20 = vand.u32 4294901760, %v21_v61  ;;  %v40_v14 = vld [vmem:[%s3085_s1 + $0x88] sm:$0xff] }
  0x2d   :  { %407 = vmatpush.msrb.mxu2 %v2100_v12  ;;  %470 = vmatpush.msrb.mxu3 %v469_v47  ;;  %v481_v59 = vand.u32 4294901760, %v480_v36  ;;  %v3125_v47 = vand.u32 4294901760, %v2228_v15 }
  0x2e   :  { %317 = vmatpush.msrb.mxu0 %v3120_v3  ;;  %366 = vmatpush.msrb.mxu1 %v1873_v4  ;;  %v486_v0 = vsub.f32 %v2190_v35, %v3121_v41  ;;  %v3122_v4 = vand.u32 4294901760, %v1937_v29  ;;  %v3123_v3 = vand.u32 4294901760, %v2205_v45  ;;  %v2278_v29 = vsub.f32 %v42_v32, %v2246_v19 }
  0x2f   :  { %409 = vmatpush.msrb.mxu2 %v2116_v26  ;;  %476 = vmatpush.msrb.mxu3 %v475_v43  ;;  %v498_v36 = vsub.f32 %v2228_v15, %v3125_v47  ;;  %v2292_v13 = vsub.f32 %v21_v61, %v2262_v20  ;;  %v3127_v43 = vand.u32 4294901760, %v2244_v2  ;;  %v2305_v61 = vsub.f32 %v41_v27, %v2275_v37 }
  0x30   :  { %321 = vmatpush.msrb.mxu0 %v3122_v4  ;;  %368 = vmatpush.msrb.mxu1 %v1875_v5  ;;  %v492_v41 = vsub.f32 %v2205_v45, %v3123_v3  ;;  %v3124_v5 = vand.u32 4294901760, %v1965_v40  ;;  %v487_v4 = vand.u32 4294901760, %v486_v0  ;;  %v39_v3 = vld [vmem:[%s3085_s1 + $0x80] sm:$0xff]  ;;  %v2294_v40 = vand.u32 4294901760, %v40_v14 }
  0x31   :  { %411 = vmatpush.msrb.mxu2 %v2132_v51  ;;  %482 = vmatpush.msrb.mxu3 %v481_v59  ;;  %v515_v47 = vand.u32 4294901760, %v2278_v29  ;;  %v2307_v32 = vand.u32 4294901760, %v39_v3 }
  0x32   :  { %325 = vmatpush.msrb.mxu0 %v3124_v5  ;;  %370 = vmatpush.msrb.mxu1 %v1886_v9  ;;  %v3126_v9 = vand.u32 4294901760, %v1979_v46  ;;  %v493_v0 = vand.u32 4294901760, %v492_v41  ;;  %v504_v5 = vsub.f32 %v2244_v2, %v3127_v43  ;;  %v3128_v46 = vand.u32 4294901760, %v1994_v52 }
  0x33   :  { %413 = vmatpush.msrb.mxu2 %v2150_v28  ;;  %488 = vmatpush.msrb.mxu3 %v487_v4  ;;  %v3129_v41 = vand.u32 4294901760, %v2260_v48  ;;  %v2318_v27 = vsub.f32 %v40_v14, %v2294_v40  ;;  %v3130_v43 = vand.u32 4294901760, %v2009_v58  ;;  %v516_v52 = vsub.f32 %v2278_v29, %v515_v47 }
  0x34   :  { %329 = vmatpush.msrb.mxu0 %v3126_v9  ;;  %372 = vmatpush.msrb.mxu1 %v1888_v10  ;;  %v499_v10 = vand.u32 4294901760, %v498_v36  ;;  %v93_v9 = vand.u32 4294901760, %v2292_v13  ;;  %v521_v4 = vand.u32 4294901760, %v2305_v61  ;;  %v2329_v36 = vsub.f32 %v39_v3, %v2307_v32 }
  0x35   :  { %415 = vmatpush.msrb.mxu2 %v2160_v6  ;;  %v510_v59 = vsub.f32 %v2260_v48, %v3129_v41  ;;  %494 = vmatpush.msrb.mxu3 %v493_v0  ;;  %v3131_v14 = vand.u32 4294901760, %v2027_v1  ;;  %v3132_v3 = vand.u32 4294901760, %v2038_v7  ;;  %v3133_v41 = vand.u32 4294901760, %v2064_v39 }
  0x36   :  { %333 = vmatpush.msrb.mxu0 %v3128_v46  ;;  %374 = vmatpush.msrb.mxu1 %v1890_v11  ;;  %v505_v11 = vand.u32 4294901760, %v504_v5  ;;  %v94_v0 = vsub.f32 %v2292_v13, %v93_v9  ;;  %v527_v5 = vand.u32 4294901760, %v2318_v27  ;;  %v522_v1 = vsub.f32 %v2305_v61, %v521_v4 }
  0x37   :  { %417 = vmatpush.msrb.mxu2 %v2173_v23  ;;  %500 = vmatpush.msrb.mxu3 %v499_v10  ;;  %v511_v58 = vand.u32 4294901760, %v510_v59  ;;  %v533_v46 = vand.u32 4294901760, %v2329_v36  ;;  %v3134_v59 = vand.u32 4294901760, %v2080_v49 }
  0x38   :  { %337 = vmatpush.msrb.mxu0 %v3130_v43  ;;  %376 = vmatpush.msrb.mxu1 %v1909_v17  ;;  %v22_v17 = vld [vmem:[%s3084_s0 + $0x8] sm:$0xff]  ;;  %v528_v7 = vsub.f32 %v2318_v27, %v527_v5  ;;  %v523_v39 = vand.u32 4294901760, %v522_v1 }
  0x39   :  { %419 = vmatpush.msrb.mxu2 %v2200_v60  ;;  %506 = vmatpush.msrb.mxu3 %v505_v11  ;;  %v2348_v10 = vand.u32 4294901760, %v22_v17  ;;  %v3135_v11 = vand.u32 4294901760, %v2087_v55  ;;  %v3139_v55 = vand.u32 4294901760, %v2130_v57 }
  0x3a   :  { %341 = vmatpush.msrb.mxu0 %v3131_v14  ;;  %378 = vmatpush.msrb.mxu1 %v1928_v25  ;;  %v517_v25 = vand.u32 4294901760, %v516_v52 }
  0x3b   :  { %421 = vmatpush.msrb.mxu2 %v2215_v16  ;;  %512 = vmatpush.msrb.mxu3 %v511_v58  ;;  %v2365_v43 = vsub.f32 %v22_v17, %v2348_v10 }
  0x3c   :  { %345 = vmatpush.msrb.mxu0 %v3132_v3  ;;  %380 = vmatpush.msrb.mxu1 %v1950_v33  ;;  %v95_v33 = vand.u32 4294901760, %v94_v0 }
  0x3d   :  { %423 = vmatpush.msrb.mxu2 %v2230_v18  ;;  %518 = vmatpush.msrb.mxu3 %v517_v25  ;;  %v434_v52 = vand.u32 4294901760, %v2365_v43 }
  0x3e   :  { %349 = vmatpush.msrb.mxu0 %v3133_v41  ;;  %382 = vmatpush.msrb.mxu1 %v1953_v34  ;;  %v534_v34 = vsub.f32 %v2329_v36, %v533_v46  ;;  %v1063_v41 = vld [vmem:[%s3088_s4 + $0x78] sm:$0xff] }
  0x3f   :  { %425 = vmatpush.msrb.mxu2 %v2246_v19  ;;  %96 = vmatmul.f32.vlgmr.msra.gmra.mxu0 %v95_v33  ;;  %v1062_v33 = vld [vmem:[%s3088_s4 + $0x70] sm:$0xff] }
  0x40   :  { %353 = vmatpush.msrb.mxu0 %v3134_v59  ;;  %384 = vmatpush.msrb.mxu1 %v1975_v44  ;;  %v529_v44 = vand.u32 4294901760, %v528_v7  ;;  %v535_v49 = vand.u32 4294901760, %v534_v34  ;;  %v1061_v7 = vld [vmem:[%s3088_s4 + $0x68] sm:$0xff]  ;;  %v2492_v59 = vand.u32 4294901760, %v1063_v41 }
  0x41   :  { %427 = vmatpush.msrb.mxu2 %v2275_v37  ;;  %524 = vmatpush.msrb.mxu3 %v523_v39  ;;  %v2494_v39 = vand.u32 4294901760, %v1062_v33  ;;  %v2496_v34 = vand.u32 4294901760, %v1061_v7 }
  0x42   :  { %357 = vmatpush.msrb.mxu0 %v3135_v11  ;;  %386 = vmatpush.msrb.mxu1 %v1990_v50  ;;  %v3136_v50 = vand.u32 4294901760, %v2070_v42  ;;  %v2502_v11 = vsub.f32 %v1063_v41, %v2492_v59 }
  0x43   :  { %429 = vmatpush.msrb.mxu2 %v2294_v40  ;;  %530 = vmatpush.msrb.mxu3 %v529_v44  ;;  %v2505_v44 = vsub.f32 %v1062_v33, %v2494_v39 }
  0x44   :  { %544 = vmatpush.msra.mxu0 %v2070_v42  ;;  %388 = vmatpush.msrb.mxu1 %v1998_v53  ;;  %v435_v53 = vsub.f32 %v2365_v43, %v434_v52 }
  0x45   :  { %431 = vmatpush.msrb.mxu2 %v2307_v32  ;;  %536 = vmatpush.msrb.mxu3 %v535_v49 }
  0x46   :  { %547 = vmatpush.msra.mxu0 %v2090_v56  ;;  %390 = vmatpush.msrb.mxu1 %v2023_v63  ;;  %v3137_v63 = vand.u32 4294901760, %v2090_v56  ;;  %v436_v42 = vand.u32 4294901760, %v435_v53 }
  0x47   :  { %251 = vmatmul.f32.vlgmr.msra.gmra.mxu2 %v2292_v13  ;;  %290 = vmatmul.f32.vlgmr.msra.gmra.mxu3 %v93_v9 }
  0x48   :  { %550 = vmatpush.msra.mxu0 %v2114_v38  ;;  %638 = vmatpush.msra.mxu2 %v3136_v50 }
  0x49   :  { %392 = vmatpush.msrb.mxu1 %v2046_v21  ;;  %705 = vmatpush.msra.mxu3 %v2040_v8  ;;  %v3138_v21 = vand.u32 4294901760, %v2114_v38 }
  0x4a   :  { %553 = vmatpush.msra.mxu0 %v2130_v57  ;;  %642 = vmatpush.msra.mxu2 %v3137_v63  ;;  %v3141_v57 = vand.u32 4294901760, %v2168_v24 }
  0x4b   :  { %394 = vmatpush.msrb.mxu1 %v2051_v30  ;;  %707 = vmatpush.msra.mxu3 %v2053_v31  ;;  %v3140_v30 = vand.u32 4294901760, %v2148_v62 }
  0x4c   :  { %556 = vmatpush.msra.mxu0 %v2148_v62  ;;  %197 = vmatmul.f32.vlgmr.msra.gmra.mxu1 %v2262_v20 }
  0x4d   :  { %646 = vmatpush.msra.mxu2 %v3138_v21  ;;  %597 = vmatpush.msra.mxu1 %v2040_v8  ;;  %v3142_v8 = vand.u32 4294901760, %v2184_v22  ;;  %v1123_v21 = vand.u32 4294901760, %v2502_v11 }
  0x4e   :  { %559 = vmatpush.msra.mxu0 %v2168_v24  ;;  %709 = vmatpush.msra.mxu3 %v2082_v54  ;;  %v3143_v24 = vand.u32 4294901760, %v2190_v35 }
  0x4f   :  { %650 = vmatpush.msra.mxu2 %v3139_v55  ;;  %599 = vmatpush.msra.mxu1 %v2053_v31  ;;  %v3147_v31 = vand.u32 4294901760, %v2260_v48 }
  0x50   :  { %437 = vmatmul.f32.vlgmr.msrb.gmra.mxu2 %v436_v42  ;;  %562 = vmatpush.msra.mxu0 %v2184_v22  ;;  %v2514_v42 = vsub.f32 %v1061_v7, %v2496_v34 }
  0x51   :  { %601 = vmatpush.msra.mxu1 %v2082_v54  ;;  %654 = vmatpush.msra.mxu2 %v3140_v30 }
  0x52   :  { %711 = vmatpush.msra.mxu3 %v2100_v12  ;;  %359 = vmatmul.f32.vlgmr.msrb.gmra.mxu0 %v2262_v20 }
  0x53   :  { %538 = vmatmul.f32.vlgmr.msrb.gmra.mxu3 %v2348_v10  ;;  %565 = vmatpush.msra.mxu0 %v2190_v35 }
  0x54   :  { %603 = vmatpush.msra.mxu1 %v2100_v12  ;;  %658 = vmatpush.msra.mxu2 %v3141_v57  ;;  %v1058_v57 = vld [vmem:[%s3088_s4 + $0x50] sm:$0xff] }
  0x55   :  { %713 = vmatpush.msra.mxu3 %v2116_v26  ;;  %396 = vmatmul.f32.vlgmr.msrb.gmra.mxu1 %v2262_v20 }
  0x56   :  { %568 = vmatpush.msra.mxu0 %v2205_v45  ;;  %605 = vmatpush.msra.mxu1 %v2116_v26  ;;  %v3144_v26 = vand.u32 4294901760, %v2205_v45 }
  0x57   :  { %662 = vmatpush.msra.mxu2 %v3142_v8  ;;  %715 = vmatpush.msra.mxu3 %v2132_v51  ;;  %v1129_v8 = vand.u32 4294901760, %v2505_v44 }
  0x58   :  { %571 = vmatpush.msra.mxu0 %v2228_v15  ;;  %607 = vmatpush.msra.mxu1 %v2132_v51  ;;  %v3145_v51 = vand.u32 4294901760, %v2228_v15 }
  0x59   :  { %666 = vmatpush.msra.mxu2 %v3143_v24  ;;  %717 = vmatpush.msra.mxu3 %v2150_v28 }
  0x5a   :  { %574 = vmatpush.msra.mxu0 %v2244_v2  ;;  %609 = vmatpush.msra.mxu1 %v2150_v28  ;;  %v3146_v28 = vand.u32 4294901760, %v2244_v2 }
  0x5b   :  { %670 = vmatpush.msra.mxu2 %v3144_v26  ;;  %719 = vmatpush.msra.mxu3 %v2160_v6 }
  0x5c   :  { %577 = vmatpush.msra.mxu0 %v2260_v48  ;;  %611 = vmatpush.msra.mxu1 %v2160_v6 }
  0x5d   :  { %674 = vmatpush.msra.mxu2 %v3145_v51  ;;  %721 = vmatpush.msra.mxu3 %v2173_v23  ;;  %v1057_v51 = vld [vmem:[%s3088_s4 + $0x48] sm:$0xff] }
  0x5e   :  { %580 = vmatpush.msra.mxu0 %v2278_v29  ;;  %613 = vmatpush.msra.mxu1 %v2173_v23  ;;  %v1796_v23 = vld [vmem:[%s3086_s2] ss:$0 sm:$0xff] }
  0x5f   :  { %678 = vmatpush.msra.mxu2 %v3146_v28  ;;  %723 = vmatpush.msra.mxu3 %v2200_v60  ;;  %v1124_v28 = vsub.f32 %v2502_v11, %v1123_v21 }
  0x60   :  { %583 = vmatpush.msra.mxu0 %v2305_v61  ;;  %615 = vmatpush.msra.mxu1 %v2200_v60  ;;  %v749_v60 = vld [vmem:[%s3087_s3] sm:$0xff] }
  0x61   :  { %682 = vmatpush.msra.mxu2 %v3147_v31  ;;  %725 = vmatpush.msra.mxu3 %v2215_v16  ;;  %v769_v45 = vand.u32 4294901760, %v749_v60  ;;  %v1135_v31 = vand.u32 4294901760, %v2514_v42 }
  0x62   :  { %586 = vmatpush.msra.mxu0 %v2318_v27  ;;  %617 = vmatpush.msra.mxu1 %v2215_v16 }
  0x63   :  { %686 = vmatpush.msra.mxu2 %v515_v47  ;;  %727 = vmatpush.msra.mxu3 %v2230_v18 }
  0x64   :  { %589 = vmatpush.msra.mxu0 %v2329_v36  ;;  %619 = vmatpush.msra.mxu1 %v2230_v18  ;;  %v796_v18 = vsub.f32 %v749_v60, %v769_v45  ;;  %v1136_v60 = vsub.f32 %v2514_v42, %v1135_v31 }
  0x65   :  { %690 = vmatpush.msra.mxu2 %v521_v4  ;;  %729 = vmatpush.msra.mxu3 %v2246_v19 }
  0x66   :  { %592 = vmatmul.f32.vlgmr.msra.gmra.mxu0 %v2365_v43  ;;  %621 = vmatpush.msra.mxu1 %v2246_v19  ;;  %v797_v19 = vand.u32 4294901760, %v796_v18  ;;  %v1060_v43 = vld [vmem:[%s3088_s4 + $0x60] sm:$0xff] }
  0x67   :  { %694 = vmatpush.msra.mxu2 %v527_v5  ;;  %731 = vmatpush.msra.mxu3 %v2275_v37  ;;  %v2507_v49 = vand.u32 4294901760, %v1060_v43 }
  0x68   :  { %623 = vmatpush.msra.mxu1 %v2275_v37  ;;  %770 = vmatpush.msrb.mxu0 %v769_v45  ;;  %v798_v20 = vsub.f32 %v796_v18, %v797_v19 }
  0x69   :  { %698 = vmatpush.msra.mxu2 %v533_v46  ;;  %733 = vmatpush.msra.mxu3 %v2294_v40  ;;  %v2525_v24 = vsub.f32 %v1060_v43, %v2507_v49 }
  0x6a   :  { %700 = vmatmul.f32.vlgmr.msra.gmra.mxu2 %v2348_v10  ;;  %625 = vmatpush.msra.mxu1 %v2294_v40  ;;  %v799_v13 = vand.u32 4294901760, %v798_v20  ;;  %v750_v40 = vld [vmem:[%s3087_s3 + $0x8] sm:$0xff] }
  0x6b   :  { %735 = vmatpush.msra.mxu3 %v2307_v32  ;;  %823 = vmatpush.msrb.mxu2 %v796_v18  ;;  %v915_v61 = vand.u32 4294901760, %v750_v40 }
  0x6c   :  { %737 = vmatmul.f32.vlgmr.msra.gmra.mxu3 %v2348_v10  ;;  %627 = vmatpush.msra.mxu1 %v2307_v32 }
  0x6d   :  { %631 = vmatmul.f32.vlgmr.msra.gmra.mxu1 %v434_v52  ;;  %846 = vmatpush.msrb.mxu3 %v769_v45  ;;  %v2479_v27 = vsub.f32 %v750_v40, %v915_v61  ;;  %v1059_v52 = vld [vmem:[%s3088_s4 + $0x58] sm:$0xff] }
  0x6e   :  { %872 = vmatpush.msra.mxu0 %v797_v19  ;;  %800 = vmatpush.msrb.mxu1 %v799_v13  ;;  %v2518_v30 = vand.u32 4294901760, %v1059_v52  ;;  %v1054_v19 = vld [vmem:[%s3088_s4 + $0x30] sm:$0xff] }
  0x6f   :  { %916 = vmatpush.msra.mxu2 %v915_v61  ;;  %v943_v14 = vand.u32 4294901760, %v2479_v27 }
  0x70   :  { %894 = vmatpush.msra.mxu1 %v769_v45 }
  0x71   :  { %v944_v58 = vsub.f32 %v2479_v27, %v943_v14 }
  0x73   :  { %v945_v3 = vand.u32 4294901760, %v944_v58  ;;  %v1051_v58 = vld [vmem:[%s3088_s4 + $0x18] sm:$0xff] }
  0x74   :  { %v2625_v33 = vand.u32 4294901760, %v1051_v58 }
  0x75   :  { %946 = vmatpush.msra.mxu3 %v945_v3 }
  0xbc   :  { %v97_v38 = vpop.f32.mrf.mxu0 }
  0xbd   :  { %v98_v54 = vadd.f32 %v1796_v23, %v97_v38  ;;  %v2538_v23 = vand.u32 4294901760, %v1058_v57 }
  0xbf   :  { %v2562_v45 = vsub.f32 %v1058_v57, %v2538_v23 }
  0xc1   :  { %v1153_v40 = vand.u32 4294901760, %v2562_v45 }
  0xc9   :  { %v198_v56 = vpop.f32.mrf.mxu1 }
  0xca   :  { %v199_v62 = vadd.f32 %v198_v56, %v98_v54  ;;  %v252_v12 = vpop.f32.mrf.mxu2  ;;  %v291_v22 = vpop.f32.mrf.mxu3  ;;  %v2543_v54 = vsub.f32 %v1059_v52, %v2518_v30  ;;  %v1056_v56 = vld [vmem:[%s3088_s4 + $0x40] sm:$0xff] }
  0xcc   :  { %v253_v6 = vadd.f32 %v252_v12, %v199_v62  ;;  %v1130_v62 = vsub.f32 %v2505_v44, %v1129_v8  ;;  %v1141_v12 = vand.u32 4294901760, %v2525_v24  ;;  %v1147_v18 = vand.u32 4294901760, %v2543_v54 }
  0xce   :  { %v292_v35 = vadd.f32 %v291_v22, %v253_v6  ;;  %v2552_v6 = vand.u32 4294901760, %v1057_v51 }
  0xcf   :  { %v360_v15 = vpop.f32.mrf.mxu0 }
  0xd0   :  { %v361_v16 = vadd.f32 %v360_v15, %v292_v35  ;;  %v1055_v35 = vld [vmem:[%s3088_s4 + $0x38] sm:$0xff]  ;;  %v1125_v15 = vand.u32 4294901760, %v1124_v28  ;;  %v2574_v20 = vsub.f32 %v1057_v51, %v2552_v6  ;;  %v2645_v51 = vsub.f32 %v1051_v58, %v2625_v33 }
  0xd1   :  { %v2576_v13 = vand.u32 4294901760, %v1055_v35 }
  0xd2   :  { %v397_v2 = vpop.f32.mrf.mxu1 }
  0xd3   :  { %v398_v37 = vadd.f32 %v397_v2, %v361_v16  ;;  %v438_v48 = vpop.f32.mrf.mxu2  ;;  %v2564_v16 = vand.u32 4294901760, %v1056_v56 }
  0xd5   :  { %v439_v29 = vadd.f32 %v438_v48, %v398_v37  ;;  %v1131_v37 = vand.u32 4294901760, %v1130_v62  ;;  %v1142_v48 = vsub.f32 %v2525_v24, %v1141_v12 }
  0xd6   :  { %v539_v32 = vpop.f32.mrf.mxu3 }
  0xd7   :  { %v540_v9 = vadd.f32 %v539_v32, %v439_v29  ;;  %v1053_v29 = vld [vmem:[%s3088_s4 + $0x28] sm:$0xff]  ;;  %v1137_v32 = vand.u32 4294901760, %v1136_v60 }
  0xe3   :  { %v593_v47 = vpop.f32.mrf.mxu0 }
  0xe4   :  { %v594_v4 = vadd.f32 %v593_v47, %v540_v9  ;;  %v2585_v47 = vsub.f32 %v1056_v56, %v2564_v16  ;;  %v1148_v9 = vsub.f32 %v2543_v54, %v1147_v18 }
  0xea   :  { %v632_v36 = vpop.f32.mrf.mxu1 }
  0xeb   :  { %v633_v17 = vadd.f32 %v632_v36, %v594_v4  ;;  %v1052_v4 = vld [vmem:[%s3088_s4 + $0x20] sm:$0xff]  ;;  %v1159_v36 = vand.u32 4294901760, %v2574_v20 }
  0xed   :  { %v701_v0 = vpop.f32.mrf.mxu2 }
  0xee   :  { %v702_v5 = vadd.f32 %v701_v0, %v633_v17  ;;  %v2600_v17 = vand.u32 4294901760, %v1053_v29  ;;  %v1154_v0 = vsub.f32 %v2562_v45, %v1153_v40 }
  0xef   :  { %v738_v25 = vpop.f32.mrf.mxu3 }
  0xf0   :  { %v739_v1 = vadd.f32 %v738_v25, %v702_v5  ;;  %v1165_v5 = vand.u32 4294901760, %v2585_v47  ;;  %v2614_v25 = vand.u32 4294901760, %v1052_v4  ;;  %v2623_v41 = vsub.f32 %v1053_v29, %v2600_v17  ;;  %v1049_v29 = vld [vmem:[%s3088_s4 + $0x8] sm:$0xff] }
  0xf1   :  { %v1155_v7 = vand.u32 4294901760, %v1154_v0 }
  0xf2   :  { %1797 = vtanh.f32 %v739_v1  ;;  %v1149_v1 = vand.u32 4294901760, %v1148_v9  ;;  %v1166_v43 = vsub.f32 %v2585_v47, %v1165_v5  ;;  %v1183_v57 = vand.u32 4294901760, %v2623_v41 }
  0xf3   :  { %v2705_v9 = vand.u32 4294901760, %v1049_v29 }
  0xf4   :  { %v1167_v28 = vand.u32 4294901760, %v1166_v43  ;;  %v1184_v62 = vsub.f32 %v2623_v41, %v1183_v57 }
  0xf5   :  { %v2714_v58 = vsub.f32 %v1049_v29, %v2705_v9 }
  0xf6   :  { %v1185_v60 = vand.u32 4294901760, %v1184_v62 }
  0xf8   :  { %v1798_v46 = vpop.eup %1797 }
  0xf9   :  { %v742_v10 = vmul.f32 1.442695, %v1798_v46  ;;  %v1160_v46 = vsub.f32 %v2574_v20, %v1159_v36 }
  0xfb   :  { %1799 = vpow2.f32 %v742_v10 }
 0x101   :  { %v1800_v50 = vpop.eup %1799 }
 0x102   :  { %v745_v53 = vsel %vm744_vm0, %v1800_v50, 0.0  ;;  %v752_v63 = vsel %vm744_vm0, %v1800_v50, 0  ;;  %v2635_v50 = vsub.f32 %v1052_v4, %v2614_v25  ;;  %v1048_v4 = vld [vmem:[%s3088_s4] sm:$0xff] }
 0x103   :  { %746 = vadd.xlane.f32.xlu0 %v745_v53  ;;  %v2516_v55 = vand.u32 4294901760, %v752_v63  ;;  %v1161_v53 = vand.u32 4294901760, %v1160_v46  ;;  %v2717_v0 = vand.u32 4294901760, %v1048_v4  ;;  %v1207_v46 = vand.u32 4294901760, %v2714_v58 }
 0x104   :  { %v1189_v56 = vand.u32 4294901760, %v2635_v50 }
 0x105   :  { %v2528_v26 = vsub.f32 %v752_v63, %v2516_v55  ;;  %802 = vmatmul.f32.vlgmr.msrb.gmra.mxu1 %v2516_v55 }
 0x106   :  { %992 = vmatpush.msrb.mxu1 %v915_v61 }
 0x107   :  { %826 = vmatmul.f32.vlgmr.msrb.gmra.mxu2 %v2528_v26  ;;  %v773_v38 = vand.u32 4294901760, %v2528_v26 }
 0x108   :  { %1018 = vmatpush.msrb.mxu2 %v943_v14  ;;  %v2598_v14 = vsub.f32 %v1055_v35, %v2576_v13 }
 0x109   :  { %850 = vmatmul.f32.vlgmr.msrb.gmra.mxu3 %v773_v38  ;;  %v774_v22 = vsub.f32 %v2528_v26, %v773_v38 }
 0x10a   :  { %1040 = vmatpush.msrb.mxu3 %v915_v61  ;;  %v2587_v61 = vand.u32 4294901760, %v1054_v19  ;;  %v1171_v10 = vand.u32 4294901760, %v2598_v14 }
 0x10b   :  { %v775_v2 = vand.u32 4294901760, %v774_v22  ;;  %v1195_v22 = vand.u32 4294901760, %v2645_v51 }
 0x10c   :  { %v2612_v3 = vsub.f32 %v1054_v19, %v2587_v61  ;;  %v1172_v63 = vsub.f32 %v2598_v14, %v1171_v10 }
 0x10d   :  { %776 = vmatmul.f32.vlgmr.msrb.gmra.mxu0 %v775_v2  ;;  %896 = vmatmul.f32.vlgmr.msra.gmra.mxu1 %v2516_v55 }
 0x10e   :  { %969 = vmatpush.msrb.mxu0 %v2479_v27  ;;  %1126 = vmatpush.msra.mxu1 %v1125_v15  ;;  %v1143_v27 = vand.u32 4294901760, %v1142_v48  ;;  %v1177_v52 = vand.u32 4294901760, %v2612_v3  ;;  %v1190_v15 = vsub.f32 %v2635_v50, %v1189_v56 }
 0x10f   :  { %922 = vmatmul.f32.vlgmr.msra.gmra.mxu2 %v775_v2 }
 0x110   :  { %1132 = vmatpush.msra.mxu1 %v1131_v37  ;;  %1224 = vmatpush.msra.mxu2 %v2502_v11  ;;  %v1191_v2 = vand.u32 4294901760, %v1190_v15  ;;  %v1050_v37 = vld [vmem:[%s3088_s4 + $0x10] sm:$0xff] }
 0x111   :  { %948 = vmatmul.f32.vlgmr.msra.gmra.mxu3 %v2516_v55  ;;  %v2697_v48 = vand.u32 4294901760, %v1050_v37 }
 0x112   :  { %1138 = vmatpush.msra.mxu1 %v1137_v32  ;;  %1227 = vmatpush.msra.mxu2 %v2505_v44 }
 0x113   :  { %1277 = vmatpush.msra.mxu3 %v2492_v59  ;;  %v2703_v32 = vsub.f32 %v1050_v37, %v2697_v48 }
 0x114   :  { %1144 = vmatpush.msra.mxu1 %v1143_v27  ;;  %1230 = vmatpush.msra.mxu2 %v2514_v42 }
 0x115   :  { %874 = vmatmul.f32.vlgmr.msra.gmra.mxu0 %v2516_v55  ;;  %996 = vmatmul.f32.vlgmr.msrb.gmra.mxu1 %v773_v38  ;;  %v1178_v38 = vsub.f32 %v2612_v3, %v1177_v52  ;;  %v1201_v27 = vand.u32 4294901760, %v2703_v32 }
 0x116   :  { %1279 = vmatpush.msra.mxu3 %v2494_v39  ;;  %1081 = vmatpush.msra.mxu0 %v2492_v59 }
 0x117   :  { %1020 = vmatmul.f32.vlgmr.msrb.gmra.mxu2 %v2516_v55  ;;  %1150 = vmatpush.msra.mxu1 %v1149_v1  ;;  %v1179_v35 = vand.u32 4294901760, %v1178_v38  ;;  %v1202_v1 = vsub.f32 %v2703_v32, %v1201_v27 }
 0x118   :  { %1233 = vmatpush.msra.mxu2 %v2525_v24  ;;  %1281 = vmatpush.msra.mxu3 %v2496_v34  ;;  %v1075_v24 = vld [vmem:[%s3088_s4 + $0xd8] sm:$0xff] }
 0x119   :  { %1042 = vmatmul.f32.vlgmr.msrb.gmra.mxu3 %v2516_v55  ;;  %1083 = vmatpush.msra.mxu0 %v2494_v39  ;;  %v1173_v55 = vand.u32 4294901760, %v1172_v63  ;;  %v1203_v43 = vand.u32 4294901760, %v1202_v1 }
 0x11a   :  { %1156 = vmatpush.msra.mxu1 %v1155_v7  ;;  %1236 = vmatpush.msra.mxu2 %v2543_v54  ;;  %v2726_v7 = vsub.f32 %v1048_v4, %v2717_v0  ;;  %v2796_v4 = vand.u32 4294901760, %v1075_v24  ;;  %v1074_v54 = vld [vmem:[%s3088_s4 + $0xd0] sm:$0xff] }
 0x11b   :  { %1283 = vmatpush.msra.mxu3 %v2507_v49  ;;  %1085 = vmatpush.msra.mxu0 %v2496_v34 }
 0x11c   :  { %1162 = vmatpush.msra.mxu1 %v1161_v53  ;;  %1239 = vmatpush.msra.mxu2 %v2562_v45  ;;  %v1208_v53 = vsub.f32 %v2714_v58, %v1207_v46  ;;  %v1213_v63 = vand.u32 4294901760, %v2726_v7 }
 0x11d   :  { %972 = vmatmul.f32.vlgmr.msrb.gmra.mxu0 %v2528_v26  ;;  %1285 = vmatpush.msra.mxu3 %v2518_v30  ;;  %v1196_v26 = vsub.f32 %v2645_v51, %v1195_v22 }
 0x11e   :  { %1087 = vmatpush.msra.mxu0 %v2507_v49  ;;  %1168 = vmatpush.msra.mxu1 %v1167_v28  ;;  %v1079_v28 = vld [vmem:[%s3088_s4 + $0xf8] sm:$0xff]  ;;  %v1214_v62 = vsub.f32 %v2726_v7, %v1213_v63 }
 0x11f   :  { %1242 = vmatpush.msra.mxu2 %v2574_v20  ;;  %1287 = vmatpush.msra.mxu3 %v2538_v23  ;;  %v1197_v19 = vand.u32 4294901760, %v1196_v26  ;;  %v2741_v38 = vand.u32 4294901760, %v1079_v28 }
 0x120   :  { %1089 = vmatpush.msra.mxu0 %v2518_v30  ;;  %1174 = vmatpush.msra.mxu1 %v1173_v55  ;;  %v1209_v55 = vand.u32 4294901760, %v1208_v53  ;;  %v1215_v15 = vand.u32 4294901760, %v1214_v62  ;;  %v2813_v53 = vsub.f32 %v1075_v24, %v2796_v4 }
 0x121   :  { %1245 = vmatpush.msra.mxu2 %v2585_v47  ;;  %1289 = vmatpush.msra.mxu3 %v2552_v6  ;;  %v2753_v11 = vsub.f32 %v1079_v28, %v2741_v38 }
 0x122   :  { %1091 = vmatpush.msra.mxu0 %v2538_v23  ;;  %1180 = vmatpush.msra.mxu1 %v1179_v35  ;;  %v1078_v35 = vld [vmem:[%s3088_s4 + $0xf0] sm:$0xff]  ;;  %v1488_v45 = vand.u32 4294901760, %v2813_v53 }
 0x123   :  { %1248 = vmatpush.msra.mxu2 %v2598_v14  ;;  %1291 = vmatpush.msra.mxu3 %v2564_v16  ;;  %v1464_v44 = vand.u32 4294901760, %v2753_v11 }
 0x124   :  { %1093 = vmatpush.msra.mxu0 %v2552_v6  ;;  %1186 = vmatpush.msra.mxu1 %v1185_v60  ;;  %v1077_v60 = vld [vmem:[%s3088_s4 + $0xe8] sm:$0xff] }
 0x125   :  { %1251 = vmatpush.msra.mxu2 %v2612_v3  ;;  %1293 = vmatpush.msra.mxu3 %v2576_v13  ;;  %v1465_v42 = vsub.f32 %v2753_v11, %v1464_v44  ;;  %v1069_v3 = vld [vmem:[%s3088_s4 + $0xa8] sm:$0xff] }
 0x126   :  { %1095 = vmatpush.msra.mxu0 %v2564_v16  ;;  %1192 = vmatpush.msra.mxu1 %v1191_v2  ;;  %v1076_v2 = vld [vmem:[%s3088_s4 + $0xe0] sm:$0xff] }
 0x127   :  { %1254 = vmatpush.msra.mxu2 %v2623_v41  ;;  %1295 = vmatpush.msra.mxu3 %v2587_v61  ;;  %v1068_v41 = vld [vmem:[%s3088_s4 + $0xa0] sm:$0xff] }
 0x128   :  { %1097 = vmatpush.msra.mxu0 %v2576_v13  ;;  %1198 = vmatpush.msra.mxu1 %v1197_v19  ;;  %v2780_v19 = vand.u32 4294901760, %v1076_v2 }
 0x129   :  { %1257 = vmatpush.msra.mxu2 %v2635_v50  ;;  %1297 = vmatpush.msra.mxu3 %v2600_v17  ;;  %v1067_v50 = vld [vmem:[%s3088_s4 + $0x98] sm:$0xff] }
 0x12a   :  { %1099 = vmatpush.msra.mxu0 %v2587_v61  ;;  %1204 = vmatpush.msra.mxu1 %v1203_v43  ;;  %v2799_v1 = vsub.f32 %v1076_v2, %v2780_v19  ;;  %v2810_v43 = vand.u32 4294901760, %v1074_v54 }
 0x12b   :  { %1260 = vmatpush.msra.mxu2 %v2645_v51  ;;  %1299 = vmatpush.msra.mxu3 %v2614_v25  ;;  %v1066_v51 = vld [vmem:[%s3088_s4 + $0x90] sm:$0xff] }
 0x12c   :  { %1101 = vmatpush.msra.mxu0 %v2600_v17  ;;  %1210 = vmatpush.msra.mxu1 %v1209_v55  ;;  %v1482_v28 = vand.u32 4294901760, %v2799_v1  ;;  %v2831_v20 = vsub.f32 %v1074_v54, %v2810_v43 }
 0x12d   :  { %1301 = vmatpush.msra.mxu3 %v2625_v33  ;;  %1263 = vmatpush.msra.mxu2 %v2703_v32  ;;  %v1065_v32 = vld [vmem:[%s3088_s4 + $0x88] sm:$0xff] }
 0x12e   :  { %1103 = vmatpush.msra.mxu0 %v2614_v25  ;;  %1216 = vmatpush.msra.mxu1 %v1215_v15  ;;  %v1483_v55 = vsub.f32 %v2799_v1, %v1482_v28  ;;  %v1494_v15 = vand.u32 4294901760, %v2831_v20 }
 0x12f   :  { %1303 = vmatpush.msra.mxu3 %v2697_v48  ;;  %1266 = vmatpush.msra.mxu2 %v2714_v58 }
 0x130   :  { %1105 = vmatpush.msra.mxu0 %v2625_v33  ;;  %1385 = vmatpush.msrb.mxu1 %v2492_v59  ;;  %v1466_v59 = vand.u32 4294901760, %v1465_v42  ;;  %v1495_v2 = vsub.f32 %v2831_v20, %v1494_v15 }
 0x131   :  { %1305 = vmatpush.msra.mxu3 %v2705_v9  ;;  %1269 = vmatpush.msra.mxu2 %v2726_v7 }
 0x132   :  { %1107 = vmatpush.msra.mxu0 %v2697_v48  ;;  %1387 = vmatpush.msrb.mxu1 %v2494_v39 }
 0x133   :  { %1307 = vmatpush.msra.mxu3 %v2717_v0  ;;  %1422 = vmatpush.msrb.mxu2 %v2741_v38 }
 0x134   :  { %1109 = vmatpush.msra.mxu0 %v2705_v9  ;;  %1389 = vmatpush.msrb.mxu1 %v2496_v34 }
 0x135   :  { %1467 = vmatpush.msrb.mxu3 %v1466_v59 }
 0x136   :  { %1111 = vmatpush.msra.mxu0 %v2717_v0  ;;  %1391 = vmatpush.msrb.mxu1 %v2507_v49  ;;  %v1489_v49 = vsub.f32 %v2813_v53, %v1488_v45 }
 0x138   :  { %1318 = vmatpush.msrb.mxu0 %v1123_v21  ;;  %v2755_v21 = vand.u32 4294901760, %v1078_v35  ;;  %1393 = vmatpush.msrb.mxu1 %v2518_v30  ;;  %v1490_v30 = vand.u32 4294901760, %v1489_v49 }
 0x13a   :  { %1322 = vmatpush.msrb.mxu0 %v1129_v8  ;;  %1424 = vmatpush.msrb.mxu2 %v2755_v21  ;;  %v2764_v8 = vand.u32 4294901760, %v1077_v60  ;;  %v2767_v26 = vsub.f32 %v1078_v35, %v2755_v21  ;;  %v1484_v35 = vand.u32 4294901760, %v1483_v55  ;;  %v2905_v55 = vand.u32 4294901760, %v1068_v41 }
 0x13b   :  { %1395 = vmatpush.msrb.mxu1 %v2538_v23  ;;  %v1070_v23 = vld [vmem:[%s3088_s4 + $0xb0] sm:$0xff] }
 0x13c   :  { %1326 = vmatpush.msrb.mxu0 %v1135_v31  ;;  %1426 = vmatpush.msrb.mxu2 %v2764_v8  ;;  %v1470_v31 = vand.u32 4294901760, %v2767_v26  ;;  %v2783_v37 = vsub.f32 %v1077_v60, %v2764_v8  ;;  %v2876_v54 = vand.u32 4294901760, %v1070_v23 }
 0x13d   :  { %1397 = vmatpush.msrb.mxu1 %v2552_v6 }
 0x13e   :  { %1330 = vmatpush.msrb.mxu0 %v1141_v12  ;;  %v1471_v12 = vsub.f32 %v2767_v26, %v1470_v31  ;;  %1428 = vmatpush.msrb.mxu2 %v2780_v19  ;;  %v1476_v29 = vand.u32 4294901760, %v2783_v37 }
 0x13f   :  { %1399 = vmatpush.msrb.mxu1 %v2564_v16  ;;  %v2894_v16 = vsub.f32 %v1070_v23, %v2876_v54  ;;  %v2940_v23 = vand.u32 4294901760, %v1066_v51 }
 0x140   :  { %1334 = vmatpush.msrb.mxu0 %v1147_v18  ;;  %v1472_v39 = vand.u32 4294901760, %v1471_v12  ;;  %v1477_v18 = vsub.f32 %v2783_v37, %v1476_v29  ;;  %1430 = vmatpush.msrb.mxu2 %v2796_v4 }
 0x141   :  { %1401 = vmatpush.msrb.mxu1 %v2576_v13 }
 0x142   :  { %1338 = vmatpush.msrb.mxu0 %v1153_v40  ;;  %1473 = vmatpush.msrb.mxu3 %v1472_v39  ;;  %v1478_v34 = vand.u32 4294901760, %v1477_v18  ;;  %v1073_v40 = vld [vmem:[%s3088_s4 + $0xc8] sm:$0xff]  ;;  %v2891_v18 = vand.u32 4294901760, %v1069_v3 }
 0x143   :  { %1432 = vmatpush.msrb.mxu2 %v2810_v43  ;;  %v2828_v62 = vand.u32 4294901760, %v1073_v40  ;;  %1403 = vmatpush.msrb.mxu1 %v2587_v61 }
 0x144   :  { %1342 = vmatpush.msrb.mxu0 %v1159_v36  ;;  %1479 = vmatpush.msrb.mxu3 %v1478_v34  ;;  %v1072_v36 = vld [vmem:[%s3088_s4 + $0xc0] sm:$0xff]  ;;  %v2908_v49 = vsub.f32 %v1069_v3, %v2891_v18  ;;  %v2956_v3 = vsub.f32 %v1066_v51, %v2940_v23 }
 0x145   :  { %1434 = vmatpush.msrb.mxu2 %v2828_v62  ;;  %v2844_v60 = vand.u32 4294901760, %v1072_v36  ;;  %v2847_v47 = vsub.f32 %v1073_v40, %v2828_v62  ;;  %v1518_v40 = vand.u32 4294901760, %v2894_v16  ;;  %1405 = vmatpush.msrb.mxu1 %v2600_v17 }
 0x146   :  { %1346 = vmatpush.msrb.mxu0 %v1165_v5  ;;  %v1071_v5 = vld [vmem:[%s3088_s4 + $0xb8] sm:$0xff]  ;;  %1485 = vmatpush.msrb.mxu3 %v1484_v35  ;;  %v1524_v61 = vand.u32 4294901760, %v2908_v49  ;;  %v2927_v35 = vsub.f32 %v1068_v41, %v2905_v55  ;;  %v3112_v41 = vand.u32 4294901760, %v2956_v3 }
 0x147   :  { %1436 = vmatpush.msrb.mxu2 %v2844_v60  ;;  %v1500_v42 = vand.u32 4294901760, %v2847_v47  ;;  %v2860_v24 = vand.u32 4294901760, %v1071_v5  ;;  %v2863_v14 = vsub.f32 %v1072_v36, %v2844_v60  ;;  %v2924_v36 = vand.u32 4294901760, %v1067_v50  ;;  %1407 = vmatpush.msrb.mxu1 %v2614_v25 }
 0x148   :  { %1350 = vmatpush.msrb.mxu0 %v1171_v10  ;;  %1491 = vmatpush.msrb.mxu3 %v1490_v30  ;;  %v1496_v10 = vand.u32 4294901760, %v1495_v2  ;;  %v1530_v2 = vand.u32 4294901760, %v2927_v35  ;;  %v1543_v58 = vsub.f32 %v2956_v3, %v3112_v41 }
 0x149   :  { %v1501_v59 = vsub.f32 %v2847_v47, %v1500_v42  ;;  %1438 = vmatpush.msrb.mxu2 %v2860_v24  ;;  %v1506_v12 = vand.u32 4294901760, %v2863_v14  ;;  %v2880_v6 = vsub.f32 %v1071_v5, %v2860_v24  ;;  %v1525_v5 = vsub.f32 %v2908_v49, %v1524_v61  ;;  %1409 = vmatpush.msrb.mxu1 %v2625_v33 }
 0x14a   :  { %1354 = vmatpush.msrb.mxu0 %v1177_v52  ;;  %1497 = vmatpush.msrb.mxu3 %v1496_v10  ;;  %v2944_v17 = vsub.f32 %v1067_v50, %v2924_v36  ;;  %v1531_v10 = vsub.f32 %v2927_v35, %v1530_v2 }
 0x14b   :  { %v1502_v52 = vand.u32 4294901760, %v1501_v59  ;;  %v1507_v39 = vsub.f32 %v2863_v14, %v1506_v12  ;;  %1440 = vmatpush.msrb.mxu2 %v2876_v54  ;;  %v1512_v34 = vand.u32 4294901760, %v2880_v6  ;;  %v2953_v59 = vand.u32 4294901760, %v1065_v32  ;;  %1411 = vmatpush.msrb.mxu1 %v2697_v48 }
 0x14c   :  { %1358 = vmatpush.msrb.mxu0 %v1183_v57  ;;  %v3113_v25 = vand.u32 4294901760, %v2944_v17  ;;  %v1544_v48 = vand.u32 4294901760, %v1543_v58 }
 0x14d   :  { %1503 = vmatpush.msrb.mxu3 %v1502_v52  ;;  %v1508_v57 = vand.u32 4294901760, %v1507_v39  ;;  %1442 = vmatpush.msrb.mxu2 %v2891_v18  ;;  %v1513_v13 = vsub.f32 %v2880_v6, %v1512_v34  ;;  %v1064_v52 = vld [vmem:[%s3088_s4 + $0x80] sm:$0xff]  ;;  %v1532_v39 = vand.u32 4294901760, %v1531_v10 }
 0x14e   :  { %1362 = vmatpush.msrb.mxu0 %v1189_v56  ;;  %v1519_v56 = vsub.f32 %v2894_v16, %v1518_v40  ;;  %v1537_v33 = vsub.f32 %v2944_v17, %v3113_v25  ;;  %1413 = vmatpush.msrb.mxu1 %v2705_v9 }
 0x14f   :  { %1509 = vmatpush.msrb.mxu3 %v1508_v57  ;;  %1444 = vmatpush.msrb.mxu2 %v2905_v55  ;;  %v1514_v30 = vand.u32 4294901760, %v1513_v13  ;;  %v2967_v57 = vand.u32 4294901760, %v1064_v52  ;;  %v2970_v13 = vsub.f32 %v1065_v32, %v2953_v59 }
 0x150   :  { %1366 = vmatpush.msrb.mxu0 %v1195_v22  ;;  %v1520_v22 = vand.u32 4294901760, %v1519_v56  ;;  %v1538_v7 = vand.u32 4294901760, %v1537_v33  ;;  %1415 = vmatpush.msrb.mxu1 %v2717_v0 }
 0x151   :  { %1446 = vmatpush.msrb.mxu2 %v2924_v36  ;;  %1515 = vmatpush.msrb.mxu3 %v1514_v30  ;;  %v2984_v50 = vsub.f32 %v1064_v52, %v2967_v57 }
 0x152   :  { %1370 = vmatpush.msrb.mxu0 %v1201_v27  ;;  %v1526_v27 = vand.u32 4294901760, %v1525_v5 }
 0x153   :  { %1448 = vmatpush.msrb.mxu2 %v2940_v23  ;;  %1521 = vmatpush.msrb.mxu3 %v1520_v22  ;;  %v3111_v56 = vand.u32 4294901760, %v2984_v50 }
 0x154   :  { %1374 = vmatpush.msrb.mxu0 %v1207_v46  ;;  %v3110_v46 = vand.u32 4294901760, %v2970_v13 }
 0x155   :  { %1450 = vmatpush.msrb.mxu2 %v2953_v59  ;;  %1527 = vmatpush.msrb.mxu3 %v1526_v27  ;;  %v1555_v51 = vsub.f32 %v2984_v50, %v3111_v56 }
 0x156   :  { %1378 = vmatpush.msrb.mxu0 %v1213_v63  ;;  %v1549_v63 = vsub.f32 %v2970_v13, %v3110_v46 }
 0x157   :  { %1452 = vmatpush.msrb.mxu2 %v2967_v57  ;;  %1533 = vmatpush.msrb.mxu3 %v1532_v39  ;;  %v1556_v22 = vand.u32 4294901760, %v1555_v51 }
 0x158   :  { %v1550_v30 = vand.u32 4294901760, %v1549_v63 }
 0x159   :  { %1539 = vmatpush.msrb.mxu3 %v1538_v7 }
 0x15b   :  { %1545 = vmatpush.msrb.mxu3 %v1544_v48  ;;  %v1803_v48 = vld [vmem:[%s3084_s0] sm:$0xff] }
 0x15d   :  { %1551 = vmatpush.msrb.mxu3 %v1550_v30 }
 0x15f   :  { %1557 = vmatpush.msrb.mxu3 %v1556_v22 }
 0x182   :  { %v803_v9 = vpop.f32.mrf.mxu1 }
 0x18a   :  { %v777_v5 = vpop.f32.mrf.mxu0  ;;  %v827_v32 = vpop.f32.mrf.mxu2 }
 0x18b   :  { %v804_v27 = vadd.f32 %v803_v9, %v777_v5  ;;  %v897_v33 = vpop.f32.mrf.mxu1 }
 0x18c   :  { %v851_v10 = vpop.f32.mrf.mxu3 }
 0x18d   :  { %v828_v52 = vadd.f32 %v827_v32, %v804_v27 }
 0x18f   :  { %v852_v39 = vadd.f32 %v851_v10, %v828_v52 }
 0x192   :  { %v875_v58 = vpop.f32.mrf.mxu0  ;;  %v923_v0 = vpop.f32.mrf.mxu2 }
 0x193   :  { %v876_v7 = vadd.f32 %v875_v58, %v852_v39  ;;  %v997_v9 = vpop.f32.mrf.mxu1 }
 0x194   :  { %v949_v46 = vpop.f32.mrf.mxu3 }
 0x195   :  { %v898_v63 = vadd.f32 %v897_v33, %v876_v7  ;;  %v950_v22 = vadd.f32 %v949_v46, %v923_v0 }
 0x197   :  { %v1046_v51 = vmul.f32 %v1803_v48, %v898_v63 }
 0x199   :  { %v1112_v30 = vand.u32 4294901760, %v1046_v51 }
 0x19a   :  { %v973_v56 = vpop.f32.mrf.mxu0  ;;  %v1021_v27 = vpop.f32.mrf.mxu2 }
 0x19b   :  { %v1113_v41 = vsub.f32 %v1046_v51, %v1112_v30  ;;  %v974_v25 = vadd.f32 %v973_v56, %v950_v22  ;;  %1218 = vmatmul.f32.vlgmr.msra.gmra.mxu1 %v1112_v30 }
 0x19c   :  { %1618 = vmatpush.msra.mxu1 %v2741_v38  ;;  %v1043_v46 = vpop.f32.mrf.mxu3 }
 0x19d   :  { %v998_v5 = vadd.f32 %v997_v9, %v974_v25  ;;  %1272 = vmatmul.f32.vlgmr.msra.gmra.mxu2 %v1113_v41  ;;  %v1114_v32 = vand.u32 4294901760, %v1113_v41 }
 0x19e   :  { %1620 = vmatpush.msra.mxu1 %v2755_v21  ;;  %1659 = vmatpush.msra.mxu2 %v1464_v44  ;;  %v1804_v44 = vld [vmem:[%s3084_s0 + $0x8] sm:$0xff]  ;;  %s1831_s0 = smov [#allocation2]  }
 0x19f   :  { %v1022_v10 = vadd.f32 %v1021_v27, %v998_v5  ;;  %1311 = vmatmul.f32.vlgmr.msra.gmra.mxu3 %v1114_v32  ;;  %v1115_v52 = vsub.f32 %v1113_v41, %v1114_v32  ;;  %s1784_s25 = sshll.u32 %s1831_s0, 4  ;;  %s1785_s25 = int_to_ptr.vmem [resolvable:$true] %s1784_s25 }
 0x1a0   :  { %1622 = vmatpush.msra.mxu1 %v2764_v8  ;;  %1663 = vmatpush.msra.mxu2 %v1470_v31 }
 0x1a1   :  { %v1044_v56 = vadd.f32 %v1043_v46, %v1022_v10  ;;  %1726 = vmatpush.msra.mxu3 %v2741_v38  ;;  %v1116_v25 = vand.u32 4294901760, %v1115_v52 }
 0x1a2   :  { %1624 = vmatpush.msra.mxu1 %v2780_v19  ;;  %1667 = vmatpush.msra.mxu2 %v1476_v29  ;;  %v3151_v29 = vand.u32 4294901760, %v2984_v50 }
 0x1a3   :  { %v1047_v41 = vmul.f32 %v1804_v44, %v1044_v56  ;;  %1728 = vmatpush.msra.mxu3 %v2755_v21  ;;  %1117 = vmatmul.f32.vlgmr.msra.gmra.mxu0 %v1116_v25 }
 0x1a4   :  { %1417 = vmatmul.f32.vlgmr.msrb.gmra.mxu1 %v1112_v30  ;;  %1565 = vmatpush.msra.mxu0 %v2753_v11 }
 0x1a5   :  { %v1453_v31 = vand.u32 4294901760, %v1047_v41  ;;  %1626 = vmatpush.msra.mxu1 %v2796_v4  ;;  %1671 = vmatpush.msra.mxu2 %v1482_v28 }
 0x1a6   :  { %1730 = vmatpush.msra.mxu3 %v2764_v8  ;;  %1568 = vmatpush.msra.mxu0 %v2767_v26  ;;  %v3148_v26 = vand.u32 4294901760, %v2944_v17 }
 0x1a7   :  { %v1454_v38 = vsub.f32 %v1047_v41, %v1453_v31  ;;  %1628 = vmatpush.msra.mxu1 %v2810_v43  ;;  %1675 = vmatpush.msra.mxu2 %v1488_v45 }
 0x1a8   :  { %1732 = vmatpush.msra.mxu3 %v2780_v19  ;;  %1571 = vmatpush.msra.mxu0 %v2783_v37  ;;  %v3149_v19 = vand.u32 4294901760, %v2956_v3  ;;  %v3150_v37 = vand.u32 4294901760, %v2970_v13 }
 0x1a9   :  { %v1455_v11 = vand.u32 4294901760, %v1454_v38  ;;  %1559 = vmatmul.f32.vlgmr.msrb.gmra.mxu3 %v1453_v31  ;;  %1630 = vmatpush.msra.mxu1 %v2828_v62 }
 0x1aa   :  { %1679 = vmatpush.msra.mxu2 %v1494_v15  ;;  %1734 = vmatpush.msra.mxu3 %v2796_v4  ;;  %v747_v4 = vpop.xlane.xlu0 %746 }
 0x1ab   :  { %1574 = vmatpush.msra.mxu0 %v2799_v1  ;;  %1632 = vmatpush.msra.mxu1 %v2844_v60  ;;  %v1456_v21 = vsub.f32 %v1454_v38, %v1455_v11  ;;  %v748_v1 = vadd.f32 1e-10, %v747_v4 }
 0x1ac   :  { %1683 = vmatpush.msra.mxu2 %v1500_v42  ;;  %1736 = vmatpush.msra.mxu3 %v2810_v43 }
 0x1ad   :  { %1380 = vmatmul.f32.vlgmr.msrb.gmra.mxu0 %v1112_v30  ;;  %1634 = vmatpush.msra.mxu1 %v2860_v24  ;;  %v1457_v8 = vand.u32 4294901760, %v1456_v21  ;;  %1801 = vrcp.f32 %v748_v1  ;;  %vm1767_vm2 = vweird.f32 %v748_v1 }
 0x1ae   :  { %1577 = vmatpush.msra.mxu0 %v2813_v53  ;;  %1687 = vmatpush.msra.mxu2 %v1506_v12 }
 0x1af   :  { %1738 = vmatpush.msra.mxu3 %v2828_v62  ;;  %1636 = vmatpush.msra.mxu1 %v2876_v54 }
 0x1b0   :  { %1580 = vmatpush.msra.mxu0 %v2831_v20  ;;  %1691 = vmatpush.msra.mxu2 %v1512_v34 }
 0x1b1   :  { %1740 = vmatpush.msra.mxu3 %v2844_v60  ;;  %1458 = vmatmul.f32.vlgmr.msrb.gmra.mxu2 %v1457_v8 }
 0x1b2   :  { %1583 = vmatpush.msra.mxu0 %v2847_v47  ;;  %1638 = vmatpush.msra.mxu1 %v2891_v18 }
 0x1b3   :  { %1695 = vmatpush.msra.mxu2 %v1518_v40  ;;  %1742 = vmatpush.msra.mxu3 %v2860_v24  ;;  %v1802_v20 = vpop.eup %1801 }
 0x1b4   :  { %1586 = vmatpush.msra.mxu0 %v2863_v14  ;;  %1640 = vmatpush.msra.mxu1 %v2905_v55  ;;  %v1763_v42 = vmul.f32 %v1802_v20, %v748_v1  ;;  %vm1768_vm1 = vweird.f32 %v1802_v20 }
 0x1b5   :  { %1699 = vmatpush.msra.mxu2 %v1524_v61  ;;  %1744 = vmatpush.msra.mxu3 %v2876_v54  ;;  %vm1769_vm3 = vmor %vm1767_vm2, %vm1768_vm1 }
 0x1b6   :  { %1589 = vmatpush.msra.mxu0 %v2880_v6  ;;  %1642 = vmatpush.msra.mxu1 %v2924_v36  ;;  %v1764_v54 = vsub.f32 1.0, %v1763_v42 }
 0x1b7   :  { %1703 = vmatpush.msra.mxu2 %v1530_v2  ;;  %1746 = vmatpush.msra.mxu3 %v2891_v18 }
 0x1b8   :  { %1592 = vmatpush.msra.mxu0 %v2894_v16  ;;  %1644 = vmatpush.msra.mxu1 %v2940_v23  ;;  %v1765_v16 = vmul.f32 %v1802_v20, %v1764_v54 }
 0x1b9   :  { %1707 = vmatpush.msra.mxu2 %v3148_v26  ;;  %1748 = vmatpush.msra.mxu3 %v2905_v55 }
 0x1ba   :  { %1595 = vmatpush.msra.mxu0 %v2908_v49  ;;  %1646 = vmatpush.msra.mxu1 %v2953_v59  ;;  %v1766_v61 = vadd.f32 %v1802_v20, %v1765_v16 }
 0x1bb   :  { %1711 = vmatpush.msra.mxu2 %v3149_v19  ;;  %1750 = vmatpush.msra.mxu3 %v2924_v36 }
 0x1bc   :  { %1598 = vmatpush.msra.mxu0 %v2927_v35  ;;  %1648 = vmatpush.msra.mxu1 %v2967_v57  ;;  %v1773_v35 = vand.u32 2147483648, %v748_v1 }
 0x1bd   :  { %1715 = vmatpush.msra.mxu2 %v3150_v37  ;;  %1752 = vmatpush.msra.mxu3 %v2940_v23  ;;  %v1771_v23 = vand.u32 2147483647, %v748_v1 }
 0x1be   :  { %1652 = vmatmul.f32.vlgmr.msra.gmra.mxu1 %v1455_v11  ;;  %1601 = vmatpush.msra.mxu0 %v2944_v17 }
 0x1bf   :  { %1719 = vmatpush.msra.mxu2 %v3151_v29  ;;  %1754 = vmatpush.msra.mxu3 %v2953_v59  ;;  %vm1772_vm4 = vcmp.eq.f32.partialorder %v1771_v23, 8.507059e+37 }
 0x1c0   :  { %1721 = vmatmul.f32.vlgmr.msra.gmra.mxu2 %v1453_v31  ;;  %1604 = vmatpush.msra.mxu0 %v2956_v3  ;;  %v1770_v3 = vsel %vm1769_vm3, %v1802_v20, %v1766_v61 }
 0x1c1   :  { %1756 = vmatpush.msra.mxu3 %v2967_v57 }
 0x1c2   :  { %1758 = vmatmul.f32.vlgmr.msra.gmra.mxu3 %v1453_v31  ;;  %1607 = vmatpush.msra.mxu0 %v2970_v13  ;;  %v1774_v13 = vor.u32 1.1754944e-38, %v1773_v35 }
 0x1c4   :  { %1610 = vmatpush.msra.mxu0 %v2984_v50  ;;  %v1775_v39 = vsel %vm1772_vm4, %v1774_v13, %v1770_v3 }
 0x1c5   :  { %1613 = vmatmul.f32.vlgmr.msra.gmra.mxu0 %v1454_v38 }
 0x218   :  { %v1219_v53 = vpop.f32.mrf.mxu1 }
 0x220   :  { %v1118_v43 = vpop.f32.mrf.mxu0  ;;  %v1273_v45 = vpop.f32.mrf.mxu2 }
 0x221   :  { %v1220_v28 = vadd.f32 %v1219_v53, %v1118_v43  ;;  %v1418_v14 = vpop.f32.mrf.mxu1 }
 0x222   :  { %v1312_v15 = vpop.f32.mrf.mxu3 }
 0x223   :  { %v1274_v62 = vadd.f32 %v1273_v45, %v1220_v28 }
 0x225   :  { %v1313_v47 = vadd.f32 %v1312_v15, %v1274_v62 }
 0x22a   :  { %v1381_v60 = vpop.f32.mrf.mxu0 }
 0x22b   :  { %v1382_v24 = vadd.f32 %v1381_v60, %v1313_v47 }
 0x22c   :  { %v1560_v34 = vpop.f32.mrf.mxu3 }
 0x22d   :  { %v1419_v6 = vadd.f32 %v1418_v14, %v1382_v24 }
 0x234   :  { %v1459_v12 = vpop.f32.mrf.mxu2 }
 0x235   :  { %v1460_v18 = vadd.f32 %v1459_v12, %v1419_v6 }
 0x237   :  { %v1561_v40 = vadd.f32 %v1560_v34, %v1460_v18 }
 0x23b   :  { %v1653_v36 = vpop.f32.mrf.mxu1 }
 0x242   :  { %v1614_v55 = vpop.f32.mrf.mxu0 }
 0x243   :  { %v1615_v49 = vadd.f32 %v1614_v55, %v1561_v40  ;;  %v1722_v17 = vpop.f32.mrf.mxu2 }
 0x245   :  { %v1654_v2 = vadd.f32 %v1653_v36, %v1615_v49  ;;  %v1759_v57 = vpop.f32.mrf.mxu3 }
 0x247   :  { %v1723_v59 = vadd.f32 %v1722_v17, %v1654_v2 }
 0x249   :  { %v1760_v50 = vadd.f32 %v1759_v57, %v1723_v59 }
 0x24b   :  { %v1776_v33 = vmul.f32 %v1775_v39, %v1760_v50 }
 0x24d   :  { %1778 = vst.msk [vmem:[#allocation2] sm:$0xff] %vm1777_vm5, %v1776_v33 }
 0x24e   :  { %1789 = dma.vmem_to_hbm [thread:$0]  %s1785_s25, 128, %s1787_s28, [#allocation3]  }
 0x24f   :  { %1829 = dma.done.wait [#allocation3], 128  }
 0x250   :  { %1830 = vsyncadd [#allocation3], 4294967168 }
 0x251   :  { %1794 = vsyncpa [#allocation3], 1 }

</bundles_post_ra>
